<compile_context>
chip_gen: v6e
topology: v6e:2x2x1
jax: 0.10.0
libtpu: 0.0.40
codegen_flags: <defaults>
</compile_context>

<pallas_src>
import math
import functools

import jax
import jax.numpy as jnp
from jax.experimental import pallas as pl
from jax.experimental.pallas import tpu as pltpu

_EPS = 1e-12  # matches torch.nn.functional.normalize default eps


def _round_up(x, m):
    return ((x + m - 1) // m) * m


# ----------------------------------------------------------------------------
# One-time weight preprocessing (hoist / cache this; `weight` is a parameter).
# ----------------------------------------------------------------------------
def prepare_arc_margin_weight(weight, *, k=3, weight_dtype=jnp.bfloat16):
    """weight: [O*k, F] -> normalized, regrouped slabs (k, F, O) in weight_dtype.

    Row o*k + j of `weight` (class o, sub-center j) lands at w3[j, :, o],
    pre-divided by max(||row||, eps).  Do this ONCE per weight update and
    reuse the result across forward calls.
    """
    OK, F = weight.shape
    assert OK % k == 0
    O = OK // k

    w_f32 = weight.astype(jnp.float32)
    inv_wnorm = 1.0 / jnp.maximum(
        jnp.sqrt(jnp.sum(w_f32 * w_f32, axis=-1, keepdims=True)), _EPS)   # (O*k, 1)
    w_norm = w_f32 * inv_wnorm                                            # rows in [-1, 1]

    # (O*k, F) -> (O, k, F) -> (k, F, O): contraction dim F second-last,
    # class dim O on lanes.
    w3 = jnp.transpose(w_norm.reshape(O, k, F), (1, 2, 0))
    return w3.astype(weight_dtype)


# ----------------------------------------------------------------------------
# Kernel
# ----------------------------------------------------------------------------
def _arc_margin_kernel(x_ref, w_ref, ixn_ref, o_ref, *, k):
    # x_ref  : (TB, F)      features tile (matmul dtype)
    # w_ref  : (k, F, TO)   pre-normalized sub-center weight slabs
    # ixn_ref: (TB, 1)      1 / max(||x||, eps), f32
    # o_ref  : (TB, TO)     max-over-subcenter cosine
    x = x_ref[...]

    # Sub-center 0 initializes the accumulator; k is a small static constant,
    # so the loop is unrolled at trace time.
    acc = jnp.dot(x, w_ref[0], preferred_element_type=jnp.float32)
    for j in range(1, k):
        acc = jnp.maximum(
            acc, jnp.dot(x, w_ref[j], preferred_element_type=jnp.float32))

    # Per-row positive rescale commutes with the max.
    o_ref[...] = (acc * ixn_ref[...]).astype(o_ref.dtype)


# ----------------------------------------------------------------------------
# Forward with a prepared weight (the fast path to call repeatedly).
# ----------------------------------------------------------------------------
def arc_margin_subcenter_cosine(features, w3, *,
                                x_dtype=None,
                                tile_b=256, tile_o=512,
                                weight_vmem_budget_bytes=24 << 20):
    """features: [B, F]; w3: (k, F, O) from prepare_arc_margin_weight -> [B, O]."""
    B, F = features.shape
    k, F2, O = w3.shape
    assert F == F2

    # --- per-row inverse norm of x (f32, computed from the raw features) -----
    x_f32 = features.astype(jnp.float32)
    inv_xnorm = 1.0 / jnp.maximum(
        jnp.sqrt(jnp.sum(x_f32 * x_f32, axis=-1, keepdims=True)), _EPS)   # (B, 1)

    # Matmul operand dtype follows the streamed weight dtype (bf16 default);
    # override with x_dtype if higher feature precision is required.
    mat_dtype = w3.dtype if x_dtype is None else x_dtype
    x_in = features.astype(mat_dtype)

    # --- tiling ---------------------------------------------------------------
    w_isz = jnp.dtype(w3.dtype).itemsize
    x_isz = jnp.dtype(mat_dtype).itemsize
    o_isz = jnp.dtype(features.dtype).itemsize

    TB = min(tile_b, _round_up(B, 8))       # multiple of 8 sublanes
    TO = min(tile_o, _round_up(O, 128))     # multiple of 128 lanes
    # Shrink TO so the double-buffered weight stream fits a conservative VMEM
    # budget (v7x: 64 MiB/TC total).
    while TO > 128 and 2 * k * F * TO * w_isz > weight_vmem_budget_bytes:
        TO -= 128
    # TODO(synk): for very large F (>~8K f32) add an inner F grid axis
    # ("arbitrary") with k f32 accumulators in scratch instead of holding the
    # full contraction dim resident.

    B_pad = _round_up(B, TB)
    O_pad = _round_up(O, TO)

    if B_pad != B:
        x_in = jnp.pad(x_in, ((0, B_pad - B), (0, 0)))
        inv_xnorm = jnp.pad(inv_xnorm, ((0, B_pad - B), (0, 0)))
    if O_pad != O:
        w3 = jnp.pad(w3, ((0, 0), (0, 0), (0, O_pad - O)))

    # Grid: O (weight) axis OUTER so each weight slab is DMA'd once and reused
    # across all B tiles; B axis inner.  O marked "parallel" so a v7x megacore
    # shards the weight (disjoint halves), B "arbitrary" so it never does.
    grid = (O_pad // TO, B_pad // TB)

    # --- VMEM budget (double-buffered streams + in-kernel f32 intermediates) --
    vmem_est = (2 * k * F * TO * w_isz        # weight slabs (dominant)
                + 2 * TB * F * x_isz          # features tile
                + 2 * TB * TO * o_isz         # output tile
                + 2 * TB * 4                  # 1/||x||
                + 2 * TB * TO * 4)            # acc + per-subcenter dot (f32)
    vmem_limit = max(16 << 20, int(1.25 * vmem_est))
    vmem_limit = min(vmem_limit, 56 << 20)    # headroom under v7x's 64 MiB/TC

    kernel = functools.partial(_arc_margin_kernel, k=k)

    out = pl.pallas_call(
        kernel,
        out_shape=jax.ShapeDtypeStruct((B_pad, O_pad), features.dtype),
        grid_spec=pltpu.PrefetchScalarGridSpec(
            num_scalar_prefetch=0,
            grid=grid,
            in_specs=[
                pl.BlockSpec((TB, F), lambda o, b: (b, 0)),         # x
                pl.BlockSpec((k, F, TO), lambda o, b: (0, 0, o)),   # weight slabs
                pl.BlockSpec((TB, 1), lambda o, b: (b, 0)),         # 1/||x||
            ],
            out_specs=pl.BlockSpec((TB, TO), lambda o, b: (b, o)),
        ),
        compiler_params=pltpu.CompilerParams(
            dimension_semantics=("parallel", "arbitrary"),
            vmem_limit_bytes=int(vmem_limit),
        ),
    )(x_in, w3, inv_xnorm)

    return out[:B, :O]


# ----------------------------------------------------------------------------
# Convenience end-to-end wrapper (preps the weight each call; prefer calling
# prepare_arc_margin_weight once and arc_margin_subcenter_cosine repeatedly).
# ----------------------------------------------------------------------------
def arc_margin_product_subcenter(features, weight, *, k=3,
                                 weight_dtype=jnp.bfloat16, **kwargs):
    w3 = prepare_arc_margin_weight(weight, k=k, weight_dtype=weight_dtype)
    return arc_margin_subcenter_cosine(features, w3, **kwargs)


# ----------------------------------------------------------------------------
# Pure-JAX reference mirroring the PyTorch forward.
# ----------------------------------------------------------------------------
def _reference(features, weight, *, k=3):
    xn = features / jnp.maximum(
        jnp.linalg.norm(features, axis=-1, keepdims=True), _EPS)
    wn = weight / jnp.maximum(
        jnp.linalg.norm(weight, axis=-1, keepdims=True), _EPS)
    cos_all = xn @ wn.T                                  # [B, O*k]
    O = weight.shape[0] // k
    cos_all = cos_all.reshape(-1, O, k)
    return jnp.max(cos_all, axis=2)


if __name__ == "__main__":
    key = jax.random.PRNGKey(0)
    k_sub = 3
    in_features = 32
    out_features = 16
    batch = 8

    k_feat, k_w = jax.random.split(key)
    features = jax.random.normal(k_feat, (batch, in_features), dtype=jnp.float32)

    # Deterministic init mirroring reset_parameters(): uniform(-stdv, stdv).
    stdv = 1.0 / math.sqrt(in_features)
    weight = jax.random.uniform(
        k_w, (out_features * k_sub, in_features),
        minval=-stdv, maxval=stdv, dtype=jnp.float32,
    )

    ref = _reference(features, weight, k=k_sub)

    # f32 path: exact match with the PyTorch semantics.
    w3_f32 = prepare_arc_margin_weight(weight, k=k_sub, weight_dtype=jnp.float32)
    out_f32 = arc_margin_subcenter_cosine(features, w3_f32)
    out_f32 = jax.block_until_ready(out_f32)
    assert out_f32.shape == (batch, out_features)
    assert jnp.allclose(out_f32, ref, atol=1e-5, rtol=1e-5)

    # Default bf16 weight-streaming path (halves the dominant weight HBM
    # traffic; norms computed in f32 before the cast, f32 MXU accumulation).
    w3_bf16 = prepare_arc_margin_weight(weight, k=k_sub)          # bf16 default
    out_bf16 = arc_margin_subcenter_cosine(features, w3_bf16)
    out_bf16 = jax.block_until_ready(out_bf16)
    assert jnp.allclose(out_bf16.astype(jnp.float32), ref, atol=2e-2, rtol=2e-2)

    # Convenience one-shot wrapper.
    out_conv = jax.block_until_ready(
        arc_margin_product_subcenter(features, weight, k=k_sub))
    assert jnp.allclose(out_conv.astype(jnp.float32), ref, atol=2e-2, rtol=2e-2)

    print("KERNEL_OK")
</pallas_src>

<mosaic_0001>
module attributes {stable_mosaic.version = 11 : i64} {
  func.func @_arc_margin_kernel(%arg0: i32, %arg1: i32, %arg2: memref<8x32xf32, #tpu.memory_space<vmem>>, %arg3: memref<3x32x128xf32, #tpu.memory_space<vmem>>, %arg4: memref<8x1xf32, #tpu.memory_space<vmem>>, %arg5: memref<8x128xf32, #tpu.memory_space<vmem>>) attributes {dimension_semantics = [#tpu.dimension_semantics<parallel>, #tpu.dimension_semantics<arbitrary>], iteration_bounds = array<i64: 1, 1>, scalar_prefetch = 0 : i64, scratch_operands = 0 : i64, tpu.core_type = #tpu.core_type<tc>, window_params = [{transform_indices = @transform_0, window_bounds = array<i64: 8, 32>}, {transform_indices = @transform_1, window_bounds = array<i64: 3, 32, 128>}, {transform_indices = @transform_2, window_bounds = array<i64: 8, 1>}, {transform_indices = @transform_3, window_bounds = array<i64: 8, 128>}]} {
    %c0 = arith.constant 0 : index
    %c0_0 = arith.constant 0 : index
    %0 = vector.load %arg2[%c0, %c0_0] : memref<8x32xf32, #tpu.memory_space<vmem>>, vector<8x32xf32>
    %c0_1 = arith.constant 0 : index
    %c0_2 = arith.constant 0 : index
    %c0_3 = arith.constant 0 : index
    %1 = vector.load %arg3[%c0_1, %c0_2, %c0_3] : memref<3x32x128xf32, #tpu.memory_space<vmem>>, vector<1x32x128xf32>
    %2 = vector.shape_cast %1 : vector<1x32x128xf32> to vector<32x128xf32>
    %cst = arith.constant dense<0.000000e+00> : vector<8x128xf32>
    %3 = tpu.matmul %0, %2, %cst {dimension_numbers = #tpu.dot_dimension_numbers<[1], [0], [0], [1], [0, 0, 1, 1], [], []>} : vector<8x32xf32>, vector<32x128xf32>, vector<8x128xf32> -> vector<8x128xf32>
    %c1 = arith.constant 1 : index
    %c0_4 = arith.constant 0 : index
    %c0_5 = arith.constant 0 : index
    %4 = vector.load %arg3[%c1, %c0_4, %c0_5] : memref<3x32x128xf32, #tpu.memory_space<vmem>>, vector<1x32x128xf32>
    %5 = vector.shape_cast %4 : vector<1x32x128xf32> to vector<32x128xf32>
    %cst_6 = arith.constant dense<0.000000e+00> : vector<8x128xf32>
    %6 = tpu.matmul %0, %5, %cst_6 {dimension_numbers = #tpu.dot_dimension_numbers<[1], [0], [0], [1], [0, 0, 1, 1], [], []>} : vector<8x32xf32>, vector<32x128xf32>, vector<8x128xf32> -> vector<8x128xf32>
    %7 = arith.maximumf %3, %6 : vector<8x128xf32>
    %c2 = arith.constant 2 : index
    %c0_7 = arith.constant 0 : index
    %c0_8 = arith.constant 0 : index
    %8 = vector.load %arg3[%c2, %c0_7, %c0_8] : memref<3x32x128xf32, #tpu.memory_space<vmem>>, vector<1x32x128xf32>
    %9 = vector.shape_cast %8 : vector<1x32x128xf32> to vector<32x128xf32>
    %cst_9 = arith.constant dense<0.000000e+00> : vector<8x128xf32>
    %10 = tpu.matmul %0, %9, %cst_9 {dimension_numbers = #tpu.dot_dimension_numbers<[1], [0], [0], [1], [0, 0, 1, 1], [], []>} : vector<8x32xf32>, vector<32x128xf32>, vector<8x128xf32> -> vector<8x128xf32>
    %11 = arith.maximumf %7, %10 : vector<8x128xf32>
    %c0_10 = arith.constant 0 : index
    %c0_11 = arith.constant 0 : index
    %12 = vector.load %arg4[%c0_10, %c0_11] : memref<8x1xf32, #tpu.memory_space<vmem>>, vector<8x1xf32>
    %13 = vector.broadcast %12 : vector<8x1xf32> to vector<8x128xf32>
    %14 = arith.mulf %11, %13 : vector<8x128xf32>
    %c0_12 = arith.constant 0 : index
    %c0_13 = arith.constant 0 : index
    %15 = vector.load %arg5[%c0_12, %c0_13] : memref<8x128xf32, #tpu.memory_space<vmem>>, vector<8x128xf32>
    tpu.vector_store %arg5[%c0_12, %c0_13], %14 {strides = array<i32>} : memref<8x128xf32, #tpu.memory_space<vmem>>, vector<8x128xf32>,
    return
  }
  func.func @transform_0(%arg0: i32, %arg1: i32) -> (i32, i32) {
    %c0_i32 = arith.constant 0 : i32
    %c0_i32_0 = arith.constant 0 : i32
    return %arg1, %c0_i32 : i32, i32
  }
  func.func @transform_1(%arg0: i32, %arg1: i32) -> (i32, i32, i32) {
    %c0_i32 = arith.constant 0 : i32
    %c0_i32_0 = arith.constant 0 : i32
    %c0_i32_1 = arith.constant 0 : i32
    return %c0_i32, %c0_i32_0, %arg0 : i32, i32, i32
  }
  func.func @transform_2(%arg0: i32, %arg1: i32) -> (i32, i32) {
    %c0_i32 = arith.constant 0 : i32
    %c0_i32_0 = arith.constant 0 : i32
    return %arg1, %c0_i32 : i32, i32
  }
  func.func @transform_3(%arg0: i32, %arg1: i32) -> (i32, i32) {
    %c0_i32 = arith.constant 0 : i32
    return %arg1, %arg0 : i32, i32
  }
}

</mosaic_0001>

<bundles_post_ra>
// kernel: tpu_custom_call.1
= control target key start
LH: loop header
LB: loop body
LE: loop exit
PB: predicated region body
PF: predicated region fallthrough
CT: control target
= control target key end

     0   :  { %8 = vsyncpa [#allocation3], 0  ;;  %s431_s0 = inlined_call_operand.vmem [shape: f32[8,32], index: 0, kind: input, shape index: {}]   ;;  %s432_s1 = inlined_call_operand.hbm [shape: f32[3,32,128], index: 1, kind: input, shape index: {}]   ;;  %s433_s2 = inlined_call_operand.vmem [shape: f32[8,1], index: 2, kind: input, shape index: {}]   ;;  %s434_s3 = inlined_call_operand.hbm [shape: f32[8,128], index: 3, kind: output, shape index: {}]  }
   0x1   :  { %9 = vsyncpa [#allocation4], 0  ;;  %s386_s12 = smov [#allocation2]  }
   0x2   :  { %s17_s13 = sshll.u32 %s386_s12, 4  ;;  %s18_s13 = int_to_ptr.vmem [resolvable:$true] %s17_s13 }
   0x3   :  { %s350_s14 = scalar_lea.vmem %s18_s13, 1536  ;;  %p355_p1 = scmp.lt.s32.totalorder %s18_s13, %s18_s13 }
   0x4   :  { %p351_p0 = scmp.ne.s32.totalorder %s18_s13, %s350_s14  ;;  %p356_p2 = scmp.lt.s32.totalorder %s350_s14, %s350_s14 }
   0x6   :  { %p357_p3 = por %p356_p2, %p355_p1 }
   0x8   :  { %p358_p4 = pnand %p357_p3, %p351_p0 }
   0xa   :  { %361 = shalt.err (!%p358_p4)
}
   0xb   :  { %s387_s15 = smov 128   ;;  %s388_s16 = smov 8  }
   0xc   :  { %23 = dma.hbm_to_vmem [thread:$0]  %s432_s1, 1536, %s18_s13, [#allocation3], %s387_s15, %s387_s15, %s388_s16  }
   0xd   :  { %382 = dma.done.wait [#allocation3], 1536  }
   0xe   :  { %383 = vsyncadd [#allocation3], 4294965760  ;;  %v389_v0 = vmov 0.0   ;;  %vm390_vm0 = vmmov 0   ;;  %v391_v1 = vmov 0   ;;  %v33_v2 = vld [vmem:[#allocation2 + $0x18] sm:$0xff] }
   0xf   :  { %301 = vmatprep.subr.mxu0 %v389_v0  ;;  %312 = vmatprep.subr.mxu1 %v389_v0  ;;  %v112_v3 = vld [vmem:[#allocation2 + $0x38] sm:$0xff]  ;;  %v32_v4 = vld [vmem:[#allocation2 + $0x10] sm:$0xff]  ;;  %v31_v6 = vld [vmem:[#allocation2 + $0x8] sm:$0xff]  ;;  %vm34_vm1 = vcmask 261120  }
  0x10   :  { %309 = vmatprep.mubr.msk.f32.mxu0 %vm390_vm0, %v389_v0  ;;  %320 = vmatprep.mubr.msk.f32.mxu1 %vm390_vm0, %v389_v0  ;;  %v111_v5 = vld [vmem:[#allocation2 + $0x30] sm:$0xff]  ;;  %v110_v7 = vld [vmem:[#allocation2 + $0x28] sm:$0xff]  ;;  %v30_v8 = vld [vmem:[#allocation2] sm:$0xff] }
  0x11   :  { %341 = vset.pattern.permute.xlu0 %v391_v1  ;;  %302 = vmatpush3.msra.mxu0 %v33_v2  ;;  %v109_v9 = vld [vmem:[#allocation2 + $0x20] sm:$0xff]  ;;  %v188_v11 = vld [vmem:[#allocation2 + $0x58] sm:$0xff]  ;;  %v187_v12 = vld [vmem:[#allocation2 + $0x50] sm:$0xff] }
  0x12   :  { %313 = vmatpush3.msra.mxu1 %v112_v3  ;;  %303 = vmatprep.subr.mxu0 %v389_v0  ;;  %v29_v10 = vld [vmem:[%s431_s0] sm:$0xff]  ;;  %v186_v14 = vld [vmem:[#allocation2 + $0x48] sm:$0xff]  ;;  %s392_s0 = smov [#allocation5]  }
  0x13   :  { %314 = vmatprep.subr.mxu1 %v389_v0  ;;  %304 = vmatpush3.msra.mxu0 %v32_v4  ;;  %v260_v13 = vld [vmem:[%s433_s2] sm:$0xff]  ;;  %s274_s2 = sshll.u32 %s392_s0, 4  ;;  %s275_s2 = int_to_ptr.vmem [resolvable:$true] %s274_s2 }
  0x14   :  { %315 = vmatpush3.msra.mxu1 %v111_v5  ;;  %305 = vmatprep.subr.mxu0 %v389_v0  ;;  %v185_v15 = vld [vmem:[#allocation2 + $0x40] sm:$0xff]  ;;  %s362_s22 = scalar_lea.vmem %s275_s2, 128  ;;  %p367_p6 = scmp.lt.s32.totalorder %s275_s2, %s275_s2 }
  0x15   :  { %316 = vmatprep.subr.mxu1 %v389_v0  ;;  %306 = vmatpush3.msra.mxu0 %v31_v6  ;;  %p363_p5 = scmp.ne.s32.totalorder %s275_s2, %s362_s22  ;;  %p368_p7 = scmp.lt.s32.totalorder %s362_s22, %s362_s22 }
  0x16   :  { %317 = vmatpush3.msra.mxu1 %v110_v7  ;;  %307 = vmatprep.subr.mxu0 %v389_v0 }
  0x17   :  { %318 = vmatprep.subr.mxu1 %v389_v0  ;;  %308 = vmatpush3.msra.mxu0 %v30_v8  ;;  %p369_p8 = por %p368_p7, %p367_p6 }
  0x18   :  { %319 = vmatpush3.msra.mxu1 %v109_v9  ;;  %310 = vmatmul.mubr.msk.f32.vlgmr.msra.gmra.mxu0 %vm34_vm1, %v29_v10 }
  0x19   :  { %323 = vmatprep.subr.mxu0 %v389_v0  ;;  %321 = vmatmul.mubr.msk.f32.vlgmr.msra.gmra.mxu1 %vm34_vm1, %v29_v10  ;;  %p370_p9 = pnand %p369_p8, %p363_p5 }
  0x1a   :  { %324 = vmatpush3.msra.mxu0 %v188_v11  ;;  %331 = vmatprep.mubr.msk.f32.mxu0 %vm390_vm0, %v389_v0 }
  0x1b   :  { %325 = vmatprep.subr.mxu0 %v389_v0  ;;  %263 = vperm.xlu0 %341, %v260_v13  }
  0x1c   :  { %326 = vmatpush3.msra.mxu0 %v187_v12 }
  0x1d   :  { %327 = vmatprep.subr.mxu0 %v389_v0 }
  0x1e   :  { %328 = vmatpush3.msra.mxu0 %v186_v14 }
  0x1f   :  { %329 = vmatprep.subr.mxu0 %v389_v0 }
  0x20   :  { %330 = vmatpush3.msra.mxu0 %v185_v15 }
  0x21   :  { %332 = vmatmul.mubr.msk.f32.vlgmr.msra.gmra.mxu0 %vm34_vm1, %v29_v10 }
  0x96   :  { %v264_v22 = vpop.permute.xlu0 %263 }
  0xd8   :  { %v104_v16 = vpop.f32.mrf.mxu0 }
  0xd9   :  { %v179_v17 = vpop.f32.mrf.mxu1 }
  0xda   :  { %v311_v18 = vpop.f32.mrf.mxu0  ;;  %v183_v20 = vmax.f32 %v104_v16, %v179_v17 }
  0xdb   :  { %v322_v19 = vpop.f32.mrf.mxu1 }
  0xe1   :  { %v255_v21 = vpop.f32.mrf.mxu0 }
  0xe2   :  { %v259_v23 = vmax.f32 %v183_v20, %v255_v21 }
  0xe3   :  { %v333_v24 = vpop.f32.mrf.mxu0 }
  0xe4   :  { %v266_v25 = vmul.f32 %v264_v22, %v259_v23 }
  0xe6   :  { %267 = vst [vmem:[#allocation5] sm:$0xff] %v266_v25 }
  0xe7   :  { %373 = shalt.err (!%p370_p9)
}
  0xe8   :  { %277 = dma.vmem_to_hbm [thread:$0]  %s275_s2, 128, %s434_s3, [#allocation4]  }
  0xe9   :  { %384 = dma.done.wait [#allocation4], 128  }
  0xea   :  { %385 = vsyncadd [#allocation4], 4294967168 }
  0xeb   :  { %281 = vsyncpa [#allocation3], 1 }
  0xec   :  { %282 = vsyncpa [#allocation4], 1 }

</bundles_post_ra>
